<compile_context>
chip_gen: v5e
topology: v5e:2x2
jax: 0.10.0
libtpu: 0.0.40
codegen_flags: <defaults>
</compile_context>

<pallas_src>
import jax
import jax.numpy as jnp
from jax.experimental import pallas as pl
from jax.experimental.pallas import tpu as pltpu

_LANES = 128
_SUBLANES = 8
_MAX_BLOCK_ROWS = 2048       # (2048, 128) f32 block = 1 MiB per input per step
_NUM_CORE_GROUPS = 2         # leading "parallel" axis (megacore chips)


def _masked_euclidean_kernel(pred_ref, target_ref, out_ref, sq_acc, cnt_acc):
    i = pl.program_id(1)

    @pl.when(i == 0)
    def _():
        sq_acc[...] = jnp.zeros_like(sq_acc)
        cnt_acc[...] = jnp.zeros_like(cnt_acc)

    t = target_ref[...].astype(jnp.float32)
    p = pred_ref[...].astype(jnp.float32)
    mask = (t > 0).astype(jnp.float32)        # single compare + cast
    d = (t - p) * mask
    # Pure elementwise (VPU) accumulation; no cross-lane work in the hot loop.
    sq_acc[...] += d * d
    cnt_acc[...] += mask

    @pl.when(i == pl.num_programs(1) - 1)
    def _():
        # One cross-lane reduction + one SMEM write per core group.
        out_ref[0, 0] = jnp.sum(sq_acc[...])
        out_ref[0, 1] = jnp.sum(cnt_acc[...])


def _round_up(x, m):
    return ((x + m - 1) // m) * m


def masked_euclidean_loss(pred, target):
    assert pred.shape == target.shape, "inconsistent dimensions"
    n = int(pred.size)

    rows = pl.cdiv(n, _LANES)
    rows8 = _round_up(rows, _SUBLANES)
    block_rows = min(_MAX_BLOCK_ROWS, rows8)
    num_blocks = pl.cdiv(rows8, block_rows)
    groups = _NUM_CORE_GROUPS if num_blocks >= _NUM_CORE_GROUPS else 1
    blocks_per_group = pl.cdiv(num_blocks, groups)
    rows_pad = groups * blocks_per_group * block_rows
    total = rows_pad * _LANES

    # Keep native dtype (cast happens in-register inside the kernel).
    p_flat = pred.reshape(-1)
    t_flat = target.reshape(-1)
    if total != n:
        # Pad only the tail; padded target == 0 => mask == 0 (no contribution).
        p_flat = jnp.pad(p_flat, (0, total - n))
        t_flat = jnp.pad(t_flat, (0, total - n))
    p2 = p_flat.reshape(rows_pad, _LANES)
    t2 = t_flat.reshape(rows_pad, _LANES)

    partials = pl.pallas_call(
        _masked_euclidean_kernel,
        out_shape=jax.ShapeDtypeStruct((groups, 2), jnp.float32),
        grid=(groups, blocks_per_group),
        in_specs=[
            pl.BlockSpec((block_rows, _LANES),
                         lambda g, i: (g * blocks_per_group + i, 0)),
            pl.BlockSpec((block_rows, _LANES),
                         lambda g, i: (g * blocks_per_group + i, 0)),
        ],
        out_specs=pl.BlockSpec((1, 2), lambda g, i: (g, 0),
                               memory_space=pltpu.SMEM),
        scratch_shapes=[
            pltpu.VMEM((block_rows, _LANES), jnp.float32),
            pltpu.VMEM((block_rows, _LANES), jnp.float32),
        ],
        compiler_params=pltpu.CompilerParams(
            dimension_semantics=("parallel", "arbitrary")),
    )(p2, t2)

    sumsq = jnp.sum(partials[:, 0])
    count = jnp.sum(partials[:, 1])
    # Final scalar division (glue) — matches torch: / valid_mask.sum() / 2
    return sumsq / count / jnp.float32(2.0)


def _reference_loss(pred, target):
    mask = (target > 0).astype(jnp.float32)
    diff = (target.astype(jnp.float32) - pred.astype(jnp.float32)) * mask
    return jnp.sum(diff * diff) / jnp.sum(mask) / 2.0


if __name__ == "__main__":
    key = jax.random.PRNGKey(0)
    k1, k2, k3, k4 = jax.random.split(key, 4)

    # Main case: NCHW-shaped inputs; target mixes positive and non-positive
    # values so the mask is non-trivial.  Exact multiple of the slab width.
    pred = jax.random.normal(k1, (2, 4, 16, 16), dtype=jnp.float32)
    target = jax.random.normal(k2, (2, 4, 16, 16), dtype=jnp.float32)

    loss = jax.block_until_ready(masked_euclidean_loss(pred, target))
    ref = jax.block_until_ready(_reference_loss(pred, target))
    assert jnp.isfinite(loss)
    assert jnp.allclose(loss, ref, rtol=1e-5, atol=1e-6), (loss, ref)

    # Ragged case: exercises the tail-padding path (size not a multiple of
    # 8*128), still small.
    pred2 = jax.random.normal(k3, (3, 5, 7, 11), dtype=jnp.float32)
    target2 = jax.random.normal(k4, (3, 5, 7, 11), dtype=jnp.float32)
    loss2 = jax.block_until_ready(masked_euclidean_loss(pred2, target2))
    ref2 = jax.block_until_ready(_reference_loss(pred2, target2))
    assert jnp.isfinite(loss2)
    assert jnp.allclose(loss2, ref2, rtol=1e-5, atol=1e-6), (loss2, ref2)

    print("KERNEL_OK")
</pallas_src>

<mosaic_0001>
module attributes {stable_mosaic.version = 11 : i64} {
  func.func @_masked_euclidean_kernel(%arg0: i32, %arg1: i32, %arg2: memref<16x128xf32, #tpu.memory_space<vmem>>, %arg3: memref<16x128xf32, #tpu.memory_space<vmem>>, %arg4: memref<1x2xf32, #tpu.memory_space<smem>>, %arg5: memref<16x128xf32, #tpu.memory_space<vmem>>, %arg6: memref<16x128xf32, #tpu.memory_space<vmem>>) attributes {dimension_semantics = [#tpu.dimension_semantics<parallel>, #tpu.dimension_semantics<arbitrary>], iteration_bounds = array<i64: 1, 1>, scalar_prefetch = 0 : i64, scratch_operands = 2 : i64, tpu.core_type = #tpu.core_type<tc>, window_params = [{transform_indices = @transform_0, window_bounds = array<i64: 16, 128>}, {transform_indices = @transform_1, window_bounds = array<i64: 16, 128>}, {transform_indices = @transform_2, window_bounds = array<i64: 1, 2>}]} {
    %c0_i32 = arith.constant 0 : i32
    %0 = arith.cmpi eq, %arg1, %c0_i32 : i32
    %1 = arith.extui %0 : i1 to i32
    %c0_i32_0 = arith.constant 0 : i32
    %2 = arith.cmpi ne, %1, %c0_i32_0 : i32
    scf.if %2 {
      %cst_14 = arith.constant 0.000000e+00 : f32
      %21 = vector.broadcast %cst_14 : f32 to vector<16x128xf32>
      %c0_15 = arith.constant 0 : index
      %c0_16 = arith.constant 0 : index
      %22 = vector.load %arg5[%c0_15, %c0_16] : memref<16x128xf32, #tpu.memory_space<vmem>>, vector<16x128xf32>
      tpu.vector_store %arg5[%c0_15, %c0_16], %21 {strides = array<i32>} : memref<16x128xf32, #tpu.memory_space<vmem>>, vector<16x128xf32>,
      %cst_17 = arith.constant 0.000000e+00 : f32
      %23 = vector.broadcast %cst_17 : f32 to vector<16x128xf32>
      %c0_18 = arith.constant 0 : index
      %c0_19 = arith.constant 0 : index
      %24 = vector.load %arg6[%c0_18, %c0_19] : memref<16x128xf32, #tpu.memory_space<vmem>>, vector<16x128xf32>
      tpu.vector_store %arg6[%c0_18, %c0_19], %23 {strides = array<i32>} : memref<16x128xf32, #tpu.memory_space<vmem>>, vector<16x128xf32>,
    } else {
    }
    %c0 = arith.constant 0 : index
    %c0_1 = arith.constant 0 : index
    %3 = vector.load %arg3[%c0, %c0_1] : memref<16x128xf32, #tpu.memory_space<vmem>>, vector<16x128xf32>
    %c0_2 = arith.constant 0 : index
    %c0_3 = arith.constant 0 : index
    %4 = vector.load %arg2[%c0_2, %c0_3] : memref<16x128xf32, #tpu.memory_space<vmem>>, vector<16x128xf32>
    %cst = arith.constant 0.000000e+00 : f32
    %5 = vector.broadcast %cst : f32 to vector<16x128xf32>
    %6 = arith.cmpf ogt, %3, %5 : vector<16x128xf32>
    %7 = arith.extui %6 : vector<16x128xi1> to vector<16x128xi32>
    %8 = arith.sitofp %7 : vector<16x128xi32> to vector<16x128xf32>
    %9 = arith.subf %3, %4 : vector<16x128xf32>
    %10 = arith.mulf %9, %8 : vector<16x128xf32>
    %c0_4 = arith.constant 0 : index
    %c0_5 = arith.constant 0 : index
    %11 = vector.load %arg5[%c0_4, %c0_5] : memref<16x128xf32, #tpu.memory_space<vmem>>, vector<16x128xf32>
    %12 = arith.mulf %10, %10 : vector<16x128xf32>
    %13 = arith.addf %11, %12 : vector<16x128xf32>
    %c0_6 = arith.constant 0 : index
    %c0_7 = arith.constant 0 : index
    %14 = vector.load %arg5[%c0_6, %c0_7] : memref<16x128xf32, #tpu.memory_space<vmem>>, vector<16x128xf32>
    tpu.vector_store %arg5[%c0_6, %c0_7], %13 {strides = array<i32>} : memref<16x128xf32, #tpu.memory_space<vmem>>, vector<16x128xf32>,
    %c0_8 = arith.constant 0 : index
    %c0_9 = arith.constant 0 : index
    %15 = vector.load %arg6[%c0_8, %c0_9] : memref<16x128xf32, #tpu.memory_space<vmem>>, vector<16x128xf32>
    %16 = arith.addf %15, %8 : vector<16x128xf32>
    %c0_10 = arith.constant 0 : index
    %c0_11 = arith.constant 0 : index
    %17 = vector.load %arg6[%c0_10, %c0_11] : memref<16x128xf32, #tpu.memory_space<vmem>>, vector<16x128xf32>
    tpu.vector_store %arg6[%c0_10, %c0_11], %16 {strides = array<i32>} : memref<16x128xf32, #tpu.memory_space<vmem>>, vector<16x128xf32>,
    %c0_i32_12 = arith.constant 0 : i32
    %18 = arith.cmpi eq, %arg1, %c0_i32_12 : i32
    %19 = arith.extui %18 : i1 to i32
    %c0_i32_13 = arith.constant 0 : i32
    %20 = arith.cmpi ne, %19, %c0_i32_13 : i32
    scf.if %20 {
      %c0_14 = arith.constant 0 : index
      %c0_15 = arith.constant 0 : index
      %21 = vector.load %arg5[%c0_14, %c0_15] : memref<16x128xf32, #tpu.memory_space<vmem>>, vector<16x128xf32>
      %22 = vector.shape_cast %21 : vector<16x128xf32> to vector<1x16x128xf32>
      %cst_16 = arith.constant dense<0.000000e+00> : vector<1xf32>
      %23 = vector.multi_reduction <add>, %22, %cst_16 [1, 2] : vector<1x16x128xf32> to vector<1xf32>
      %24 = vector.shape_cast %23 : vector<1xf32> to vector<1x1x1xf32>
      %25 = vector.extract %24[0, 0, 0] : f32 from vector<1x1x1xf32>
      %c0_17 = arith.constant 0 : index
      %c0_18 = arith.constant 0 : index
      %26 = memref.load %arg4[%c0_17, %c0_18] : memref<1x2xf32, #tpu.memory_space<smem>>
      memref.store %25, %arg4[%c0_17, %c0_18] : memref<1x2xf32, #tpu.memory_space<smem>>
      %c0_19 = arith.constant 0 : index
      %c0_20 = arith.constant 0 : index
      %27 = vector.load %arg6[%c0_19, %c0_20] : memref<16x128xf32, #tpu.memory_space<vmem>>, vector<16x128xf32>
      %28 = vector.shape_cast %27 : vector<16x128xf32> to vector<1x16x128xf32>
      %cst_21 = arith.constant dense<0.000000e+00> : vector<1xf32>
      %29 = vector.multi_reduction <add>, %28, %cst_21 [1, 2] : vector<1x16x128xf32> to vector<1xf32>
      %30 = vector.shape_cast %29 : vector<1xf32> to vector<1x1x1xf32>
      %31 = vector.extract %30[0, 0, 0] : f32 from vector<1x1x1xf32>
      %c0_22 = arith.constant 0 : index
      %c1 = arith.constant 1 : index
      %32 = memref.load %arg4[%c0_22, %c1] : memref<1x2xf32, #tpu.memory_space<smem>>
      memref.store %31, %arg4[%c0_22, %c1] : memref<1x2xf32, #tpu.memory_space<smem>>
    } else {
    }
    return
  }
  func.func @transform_0(%arg0: i32, %arg1: i32) -> (i32, i32) {
    %c1_i32 = arith.constant 1 : i32
    %0 = arith.muli %arg0, %c1_i32 : i32
    %1 = arith.addi %0, %arg1 : i32
    %c0_i32 = arith.constant 0 : i32
    %c0_i32_0 = arith.constant 0 : i32
    return %1, %c0_i32 : i32, i32
  }
  func.func @transform_1(%arg0: i32, %arg1: i32) -> (i32, i32) {
    %c1_i32 = arith.constant 1 : i32
    %0 = arith.muli %arg0, %c1_i32 : i32
    %1 = arith.addi %0, %arg1 : i32
    %c0_i32 = arith.constant 0 : i32
    %c0_i32_0 = arith.constant 0 : i32
    return %1, %c0_i32 : i32, i32
  }
  func.func @transform_2(%arg0: i32, %arg1: i32) -> (i32, i32) {
    %c0_i32 = arith.constant 0 : i32
    %c0_i32_0 = arith.constant 0 : i32
    return %arg0, %c0_i32 : i32, i32
  }
}

</mosaic_0001>

<bundles_post_ra>
// kernel: tpu_custom_call.1
= control target key start
LH: loop header
LB: loop body
LE: loop exit
PB: predicated region body
PF: predicated region fallthrough
CT: control target
= control target key end

     0   :  { %7 = vsyncpa [#allocation5], 0  ;;  %s248_s0 = inlined_call_operand.hbm [shape: f32[16,128], index: 0, kind: input, shape index: {}]   ;;  %s249_s1 = inlined_call_operand.hbm [shape: f32[16,128], index: 1, kind: input, shape index: {}]   ;;  %s250_s2 = inlined_call_operand.hbm [shape: f32[1,2], index: 2, kind: output, shape index: {}]  }
   0x1   :  { %8 = vsyncpa [#allocation8], 0 }
   0x2   :  { %9 = vsyncpa [#allocation6], 0  ;;  %s18_s11 = sshll.u32 %s248_s0, 4  ;;  %s218_s12 = smov [#allocation4]   ;;  %s19_s11 = int_to_ptr.hbm [resolvable:$true] %s18_s11 }
   0x3   :  { %s20_s13 = sshll.u32 %s218_s12, 4  ;;  %s35_s16 = sshll.u32 %s249_s1, 4  ;;  %s21_s13 = int_to_ptr.vmem [resolvable:$true] %s20_s13  ;;  %s36_s16 = int_to_ptr.hbm [resolvable:$true] %s35_s16 }
   0x4   :  { %s219_s17 = smov 128   ;;  %s220_s18 = smov 8  }
   0x5   :  { %26 = dma.hbm_to_vmem [thread:$0]  %s19_s11, 256, %s21_s13, [#allocation5], %s219_s17, %s219_s17, %s220_s18  }
   0x6   :  { %s221_s19 = smov [#allocation7]  }
   0x7   :  { %s37_s20 = sshll.u32 %s221_s19, 4  ;;  %s38_s20 = int_to_ptr.vmem [resolvable:$true] %s37_s20 }
   0x8   :  { %43 = dma.hbm_to_vmem [thread:$0]  %s36_s16, 256, %s38_s20, [#allocation8], %s219_s17, %s219_s17, %s220_s18  }
   0x9   :  { %212 = dma.done.wait [#allocation5], 256  }
   0xa   :  { %213 = vsyncadd [#allocation5], 4294967040 }
   0xb   :  { %214 = dma.done.wait [#allocation8], 256  }
   0xc   :  { %215 = vsyncadd [#allocation8], 4294967040  ;;  %v64_v0 = vld [vmem:[#allocation7] sm:$0xff]  ;;  %v65_v1 = vld [vmem:[#allocation7 + $0x8] sm:$0xff]  ;;  %v222_v5 = vmov 0.0   ;;  %s128_s22 = sshll.u32 %s250_s2, 4  ;;  %s129_s22 = int_to_ptr.hbm [resolvable:$true] %s128_s22 }
   0xd   :  { %v66_v2 = vld [vmem:[#allocation4] sm:$0xff]  ;;  %v67_v3 = vld [vmem:[#allocation4 + $0x8] sm:$0xff]  ;;  %vm68_vm0 = vcmp.gt.f32.partialorder %v64_v0, 0.0  ;;  %vm69_vm1 = vcmp.gt.f32.partialorder %v65_v1, 0.0  ;;  %s223_s24 = smov [#allocation9]  }
   0xe   :  { %v74_v4 = vsub.f32 %v64_v0, %v66_v2  ;;  %v140_v6 = vsel %vm68_vm0, 1.0, %v222_v5  ;;  %v141_v7 = vsel %vm69_vm1, 1.0, %v222_v5  ;;  %v75_v8 = vsub.f32 %v65_v1, %v67_v3 }
   0xf   :  { %v111_v14 = vadd.f32 %v141_v7, %v140_v6 }
  0x10   :  { %v76_v9 = vmul.f32 %v140_v6, %v74_v4  ;;  %v77_v10 = vmul.f32 %v141_v7, %v75_v8 }
  0x12   :  { %v80_v11 = vmul.f32 %v76_v9, %v76_v9  ;;  %v81_v12 = vmul.f32 %v77_v10, %v77_v10 }
  0x14   :  { %v97_v13 = vadd.f32 %v81_v12, %v80_v11 }
  0x16   :  { %98 = vadd.xlane.f32.xlu0 %v97_v13 }
  0x1e   :  { %112 = vadd.xlane.f32.xlu0 %v111_v14 }
  0x89   :  { %v99_v15 = vpop.xlane.xlu0 %98 }
  0x8a   :  { %v100_v16 = vrot.slane %v99_v15, 4 }
  0x8c   :  { %v101_v17 = vadd.f32 %v100_v16, %v99_v15 }
  0x8e   :  { %v102_v18 = vrot.slane %v101_v17, 2 }
  0x90   :  { %v103_v19 = vadd.f32 %v102_v18, %v101_v17 }
  0x91   :  { %v113_v20 = vpop.xlane.xlu0 %112 }
  0x92   :  { %v114_v21 = vrot.slane %v113_v20, 4  ;;  %v104_v22 = vrot.slane %v103_v19, 1 }
  0x94   :  { %v115_v23 = vadd.f32 %v114_v21, %v113_v20  ;;  %v105_v24 = vadd.f32 %v104_v22, %v103_v19 }
  0x96   :  { %v116_v25 = vrot.slane %v115_v23, 2  ;;  %142 = vpush %v105_v24 }
  0x98   :  { %v117_v26 = vadd.f32 %v116_v25, %v115_v23 }
  0x9a   :  { %v118_v27 = vrot.slane %v117_v26, 1 }
  0x9c   :  { %v119_v28 = vadd.f32 %v118_v27, %v117_v26 }
  0x9e   :  { %144 = vpush %v119_v28 }
  0xc7   :  { %s143_s0 = spop %142 }
  0xc8   :  { %108 = sst [smem:[#allocation9]] %s143_s0 }
  0xcf   :  { %s145_s23 = spop %144 }
  0xd0   :  { %122 = sst [smem:[#allocation9 + $0x1]] %s145_s23 }
  0xd1   :  { %131 = dma.smem_to_hbm %s223_s24, 16, %s129_s22, [#allocation6]  }
  0xd2   :  { %216 = dma.done.wait [#allocation6], 16  }
  0xd3   :  { %217 = vsyncadd [#allocation6], 4294967280 }
  0xd4   :  { %136 = sfence }
  0xd5   :  { %137 = vsyncpa [#allocation5], 1 }
  0xd6   :  { %138 = vsyncpa [#allocation8], 1 }
  0xd7   :  { %139 = vsyncpa [#allocation6], 1 }

</bundles_post_ra>
